<compile_context>
chip_gen: v7x
topology: tpu7x:2x2x1
jax: 0.10.0
libtpu: 0.0.40
codegen_flags: <defaults>
</compile_context>

<pallas_src>
import math

import jax
import jax.numpy as jnp
from jax.experimental import pallas as pl
from jax.experimental.pallas import tpu as pltpu


def _round_up(n, m):
    return ((n + m - 1) // m) * m


# ----------------------------------------------------------------------------
# Single-step kernels (module-compatible per-step interface).
# ----------------------------------------------------------------------------
def _rnn_step_kernel_masked(x_ref, m_ref, h_ref, w_ref, b_ref, o_ref):
    xh = jnp.concatenate([x_ref[...] * m_ref[...], h_ref[...]], axis=-1)
    o_ref[...] = jnp.tanh(
        jnp.dot(xh, w_ref[...], preferred_element_type=jnp.float32)
        + b_ref[...]
    ).astype(o_ref.dtype)


def _rnn_step_kernel(x_ref, h_ref, w_ref, b_ref, o_ref):
    xh = jnp.concatenate([x_ref[...], h_ref[...]], axis=-1)
    o_ref[...] = jnp.tanh(
        jnp.dot(xh, w_ref[...], preferred_element_type=jnp.float32)
        + b_ref[...]
    ).astype(o_ref.dtype)


def rnn_step(x_pad, h_pad, w_cat, b_cat, mask_pad=None):
    """One recurrent step: one fused MXU matmul + bias + tanh."""
    Bp, Ip = x_pad.shape
    Hp = h_pad.shape[1]
    IHp = Ip + Hp
    full = lambda shape: pl.BlockSpec(shape, lambda: (0,) * len(shape))

    if mask_pad is not None:
        kernel = _rnn_step_kernel_masked
        args = (x_pad, mask_pad, h_pad, w_cat, b_cat)
        in_specs = [full((Bp, Ip)), full((Bp, Ip)), full((Bp, Hp)),
                    full((IHp, Hp)), full((1, Hp))]
    else:
        kernel = _rnn_step_kernel
        args = (x_pad, h_pad, w_cat, b_cat)
        in_specs = [full((Bp, Ip)), full((Bp, Hp)),
                    full((IHp, Hp)), full((1, Hp))]

    return pl.pallas_call(
        kernel,
        out_shape=jax.ShapeDtypeStruct((Bp, Hp), jnp.float32),
        grid=(),
        in_specs=in_specs,
        out_specs=full((Bp, Hp)),
    )(*args)


# ----------------------------------------------------------------------------
# Fused sequence kernels: the whole time loop inside one pallas_call.
# Hidden state is a VMEM scratch accumulator; weights/bias/mask are resident
# (their BlockSpecs return the same block every grid step).
# ----------------------------------------------------------------------------
def _rnn_seq_kernel_masked(x_ref, m_ref, h0_ref, w_ref, b_ref, o_ref, h_scr):
    @pl.when(pl.program_id(0) == 0)
    def _():
        h_scr[...] = h0_ref[...]

    xh = jnp.concatenate([x_ref[...] * m_ref[...], h_scr[...]], axis=-1)
    h_new = jnp.tanh(
        jnp.dot(xh, w_ref[...], preferred_element_type=jnp.float32)
        + b_ref[...])
    h_scr[...] = h_new
    o_ref[...] = h_new.astype(o_ref.dtype)


def _rnn_seq_kernel(x_ref, h0_ref, w_ref, b_ref, o_ref, h_scr):
    @pl.when(pl.program_id(0) == 0)
    def _():
        h_scr[...] = h0_ref[...]

    xh = jnp.concatenate([x_ref[...], h_scr[...]], axis=-1)
    h_new = jnp.tanh(
        jnp.dot(xh, w_ref[...], preferred_element_type=jnp.float32)
        + b_ref[...])
    h_scr[...] = h_new
    o_ref[...] = h_new.astype(o_ref.dtype)


def rnn_sequence(x_seq_pad, h0_pad, w_cat, b_cat, mask_pad=None):
    T, Bp, Ip = x_seq_pad.shape
    Hp = h0_pad.shape[1]
    IHp = Ip + Hp

    x_spec = pl.BlockSpec((None, Bp, Ip), lambda t: (t, 0, 0))   # new x each step
    o_spec = pl.BlockSpec((None, Bp, Hp), lambda t: (t, 0, 0))
    const = lambda shape: pl.BlockSpec(shape, lambda t: (0,) * len(shape))

    if mask_pad is not None:
        kernel = _rnn_seq_kernel_masked
        args = (x_seq_pad, mask_pad, h0_pad, w_cat, b_cat)
        in_specs = [x_spec, const((Bp, Ip)), const((Bp, Hp)),
                    const((IHp, Hp)), const((1, Hp))]
    else:
        kernel = _rnn_seq_kernel
        args = (x_seq_pad, h0_pad, w_cat, b_cat)
        in_specs = [x_spec, const((Bp, Hp)), const((IHp, Hp)), const((1, Hp))]

    return pl.pallas_call(
        kernel,
        out_shape=jax.ShapeDtypeStruct((T, Bp, Hp), jnp.float32),
        grid=(T,),
        in_specs=in_specs,
        out_specs=o_spec,
        scratch_shapes=[pltpu.VMEM((Bp, Hp), jnp.float32)],
        compiler_params=pltpu.CompilerParams(
            dimension_semantics=("arbitrary",)),   # recurrent time axis
    )(*args)


# ----------------------------------------------------------------------------
# Module wrapper mirroring the PyTorch RNNCell (rnn="RNN").
# ----------------------------------------------------------------------------
class RNNCellPallas:
    def __init__(self, input_size, hidden_size, key, training=True):
        self.input_size = input_size
        self.hidden_size = hidden_size
        self.training = training
        self.mask = None          # unpadded mask (reference / PyTorch shape)
        self._mask_pad = None     # padded mask fed to the kernel

        k1, k2, k3, k4 = jax.random.split(key, 4)
        bound = 1.0 / math.sqrt(hidden_size)
        # PyTorch RNNCell parameter shapes / init: U(-1/sqrt(H), 1/sqrt(H))
        self.w_ih = jax.random.uniform(k1, (hidden_size, input_size),
                                       jnp.float32, -bound, bound)
        self.w_hh = jax.random.uniform(k2, (hidden_size, hidden_size),
                                       jnp.float32, -bound, bound)
        self.b_ih = jax.random.uniform(k3, (hidden_size,), jnp.float32,
                                       -bound, bound)
        self.b_hh = jax.random.uniform(k4, (hidden_size,), jnp.float32,
                                       -bound, bound)

        # Kernel-ready operands, computed ONCE (hoisted out of forward):
        # lane-dense padding + stacked transposed weights + merged bias.
        self.Ip = _round_up(input_size, 128)
        self.Hp = _round_up(hidden_size, 128)
        w_cat = jnp.zeros((self.Ip + self.Hp, self.Hp), jnp.float32)
        w_cat = w_cat.at[:input_size, :hidden_size].set(self.w_ih.T)
        w_cat = w_cat.at[self.Ip:self.Ip + hidden_size,
                         :hidden_size].set(self.w_hh.T)
        self.w_cat = w_cat
        b_cat = jnp.zeros((1, self.Hp), jnp.float32)
        b_cat = b_cat.at[0, :hidden_size].set(self.b_ih + self.b_hh)
        self.b_cat = b_cat

    # ---- padding helpers (zero pads keep padded lanes exactly zero) ----
    def _pad_x(self, x):
        B, I = x.shape
        Bp = _round_up(B, 8)
        return jnp.pad(x, ((0, Bp - B), (0, self.Ip - I)))

    def _pad_h(self, h):
        B, H = h.shape
        Bp = _round_up(B, 8)
        return jnp.pad(h, ((0, Bp - B), (0, self.Hp - H)))

    def _sample_mask(self, x_shape, dropout_p, mask_key):
        if mask_key is None:
            mask_key = jax.random.PRNGKey(0)
        self.mask = jax.random.bernoulli(
            mask_key, 1.0 - dropout_p, x_shape).astype(jnp.float32)
        B, I = x_shape
        Bp = _round_up(B, 8)
        self._mask_pad = jnp.pad(self.mask, ((0, Bp - B), (0, self.Ip - I)))

    # ---- per-step interface (mirrors the PyTorch module forward) ----
    def forward(self, x, hidden, step, dropout_p=0.5, *, mask_key=None):
        B = x.shape[0]
        should_mask = self.training and dropout_p > 0.0
        if should_mask and (step == 0 or self.mask is None
                            or self.mask.shape != x.shape):
            self._sample_mask(x.shape, dropout_p, mask_key)
        x_pad = self._pad_x(x)
        h_pad = self._pad_h(hidden)
        mask_pad = self._mask_pad if should_mask else None
        out = rnn_step(x_pad, h_pad, self.w_cat, self.b_cat, mask_pad)
        return out[:B, :self.hidden_size]

    # ---- fused-sequence interface: T steps, one pallas_call ----
    def forward_sequence(self, x_seq, hidden, dropout_p=0.5, *, mask_key=None):
        T, B, I = x_seq.shape
        should_mask = self.training and dropout_p > 0.0
        if should_mask:
            self._sample_mask((B, I), dropout_p, mask_key)   # step 0 of the seq
        Bp = _round_up(B, 8)
        x_pad = jnp.pad(x_seq, ((0, 0), (0, Bp - B), (0, self.Ip - I)))
        h_pad = self._pad_h(hidden)
        mask_pad = self._mask_pad if should_mask else None
        out = rnn_sequence(x_pad, h_pad, self.w_cat, self.b_cat, mask_pad)
        return out[:, :B, :self.hidden_size]


# ----------------------------------------------------------------------------
# Pure-JAX reference.
# ----------------------------------------------------------------------------
def _reference_step(x, mask, hidden, w_ih, w_hh, b_ih, b_hh):
    xm = x if mask is None else x * mask
    return jnp.tanh(xm @ w_ih.T + b_ih + hidden @ w_hh.T + b_hh)


if __name__ == "__main__":
    key = jax.random.PRNGKey(0)
    k_param, k_x, k_h, k_mask, k_seq = jax.random.split(key, 5)

    batch, input_size, hidden_size, T = 8, 32, 32, 8
    cell = RNNCellPallas(input_size, hidden_size, k_param, training=True)

    x = jax.random.normal(k_x, (batch, input_size), jnp.float32)
    h0 = jax.random.normal(k_h, (batch, hidden_size), jnp.float32)

    # --- per-step path (module-compatible): step 0 samples the mask, step 1 reuses it
    h1 = jax.block_until_ready(
        cell.forward(x, h0, step=0, dropout_p=0.5, mask_key=k_mask))
    h2 = jax.block_until_ready(cell.forward(x, h1, step=1, dropout_p=0.5))
    ref1 = _reference_step(x, cell.mask, h0, cell.w_ih, cell.w_hh,
                           cell.b_ih, cell.b_hh)
    ref2 = _reference_step(x, cell.mask, ref1, cell.w_ih, cell.w_hh,
                           cell.b_ih, cell.b_hh)
    assert jnp.allclose(h1, ref1, atol=1e-5), "step-0 mismatch"
    assert jnp.allclose(h2, ref2, atol=1e-5), "step-1 mismatch"

    # --- eval path: mask-free kernel variant (no ones-mask DMA)
    cell.training = False
    h_eval = jax.block_until_ready(cell.forward(x, h0, step=0))
    ref_eval = _reference_step(x, None, h0, cell.w_ih, cell.w_hh,
                               cell.b_ih, cell.b_hh)
    assert jnp.allclose(h_eval, ref_eval, atol=1e-5), "eval mismatch"

    # --- fused sequence path: all T steps in one pallas_call
    cell.training = True
    x_seq = jax.random.normal(k_seq, (T, batch, input_size), jnp.float32)
    hs = jax.block_until_ready(
        cell.forward_sequence(x_seq, h0, dropout_p=0.5, mask_key=k_mask))
    h_ref = h0
    ref_list = []
    for t in range(T):
        h_ref = _reference_step(x_seq[t], cell.mask, h_ref, cell.w_ih,
                                cell.w_hh, cell.b_ih, cell.b_hh)
        ref_list.append(h_ref)
    ref_seq = jnp.stack(ref_list)
    assert jnp.allclose(hs, ref_seq, atol=1e-5), "fused-sequence mismatch"

    # eval-mode fused sequence (mask-free variant)
    cell.training = False
    hs_eval = jax.block_until_ready(cell.forward_sequence(x_seq, h0))
    h_ref = h0
    ref_list = []
    for t in range(T):
        h_ref = _reference_step(x_seq[t], None, h_ref, cell.w_ih,
                                cell.w_hh, cell.b_ih, cell.b_hh)
        ref_list.append(h_ref)
    assert jnp.allclose(hs_eval, jnp.stack(ref_list), atol=1e-5), \
        "fused-sequence eval mismatch"

    print("KERNEL_OK")
</pallas_src>

<mosaic_0001>
module attributes {stable_mosaic.version = 11 : i64} {
  func.func @_rnn_step_kernel_masked(%arg0: memref<8x128xf32, #tpu.memory_space<vmem>>, %arg1: memref<8x128xf32, #tpu.memory_space<vmem>>, %arg2: memref<8x128xf32, #tpu.memory_space<vmem>>, %arg3: memref<256x128xf32, #tpu.memory_space<vmem>>, %arg4: memref<1x128xf32, #tpu.memory_space<vmem>>, %arg5: memref<8x128xf32, #tpu.memory_space<vmem>>) attributes {dimension_semantics = [], scalar_prefetch = 0 : i64, scratch_operands = 0 : i64, tpu.core_type = #tpu.core_type<tc>} {
    %c0 = arith.constant 0 : index
    %c0_0 = arith.constant 0 : index
    %0 = vector.load %arg0[%c0, %c0_0] : memref<8x128xf32, #tpu.memory_space<vmem>>, vector<8x128xf32>
    %c0_1 = arith.constant 0 : index
    %c0_2 = arith.constant 0 : index
    %1 = vector.load %arg1[%c0_1, %c0_2] : memref<8x128xf32, #tpu.memory_space<vmem>>, vector<8x128xf32>
    %2 = arith.mulf %0, %1 : vector<8x128xf32>
    %c0_3 = arith.constant 0 : index
    %c0_4 = arith.constant 0 : index
    %3 = vector.load %arg2[%c0_3, %c0_4] : memref<8x128xf32, #tpu.memory_space<vmem>>, vector<8x128xf32>
    %4 = tpu.concatenate %2, %3 in 1 : vector<8x128xf32>, vector<8x128xf32> -> vector<8x256xf32>
    %c0_5 = arith.constant 0 : index
    %c0_6 = arith.constant 0 : index
    %5 = vector.load %arg3[%c0_5, %c0_6] : memref<256x128xf32, #tpu.memory_space<vmem>>, vector<256x128xf32>
    %cst = arith.constant dense<0.000000e+00> : vector<8x128xf32>
    %6 = tpu.matmul %4, %5, %cst {dimension_numbers = #tpu.dot_dimension_numbers<[1], [0], [0], [1], [0, 0, 1, 1], [], []>} : vector<8x256xf32>, vector<256x128xf32>, vector<8x128xf32> -> vector<8x128xf32>
    %c0_7 = arith.constant 0 : index
    %c0_8 = arith.constant 0 : index
    %7 = vector.load %arg4[%c0_7, %c0_8] : memref<1x128xf32, #tpu.memory_space<vmem>>, vector<1x128xf32>
    %8 = vector.broadcast %7 : vector<1x128xf32> to vector<8x128xf32>
    %9 = arith.addf %6, %8 : vector<8x128xf32>
    %10 = math.tanh %9 : vector<8x128xf32>
    %c0_9 = arith.constant 0 : index
    %c0_10 = arith.constant 0 : index
    %11 = vector.load %arg5[%c0_9, %c0_10] : memref<8x128xf32, #tpu.memory_space<vmem>>, vector<8x128xf32>
    tpu.vector_store %arg5[%c0_9, %c0_10], %10 {strides = array<i32>} : memref<8x128xf32, #tpu.memory_space<vmem>>, vector<8x128xf32>,
    return
  }
}

</mosaic_0001>

<bundles_post_ra>
// kernel: tpu_custom_call.1
= control target key start
LH: loop header
LB: loop body
LE: loop exit
PB: predicated region body
PF: predicated region fallthrough
CT: control target
= control target key end

     0   :  { %10 = vsyncpa [#allocation3], 0  ;;  %s504_s0 = inlined_call_operand.hbm [shape: f32[8,128], index: 0, kind: input, shape index: {}]   ;;  %s505_s1 = inlined_call_operand.hbm [shape: f32[8,128], index: 1, kind: input, shape index: {}]   ;;  %s506_s2 = inlined_call_operand.hbm [shape: f32[8,128], index: 2, kind: input, shape index: {}]   ;;  %s507_s3 = inlined_call_operand.hbm [shape: f32[256,128], index: 3, kind: input, shape index: {}]   ;;  %s508_s4 = inlined_call_operand.vmem [shape: f32[1,128], index: 4, kind: input, shape index: {}]   ;;  %s509_s5 = inlined_call_operand.hbm [shape: f32[8,128], index: 5, kind: output, shape index: {}]  }
   0x1   :  { %11 = vsyncpa [#allocation6], 0 }
   0x2   :  { %12 = vsyncpa [#allocation9], 0 }
   0x3   :  { %13 = vsyncpa [#allocation4], 0  ;;  %s397_s18 = smov [#allocation5]   ;;  %s398_s20 = smov [#allocation2]  }
   0x4   :  { %s30_s19 = sshll.u32 %s397_s18, 4  ;;  %s20_s21 = sshll.u32 %s398_s20, 4  ;;  %s31_s19 = int_to_ptr.vmem [resolvable:$true] %s30_s19  ;;  %s21_s21 = int_to_ptr.vmem [resolvable:$true] %s20_s21 }
   0x5   :  { %s279_s24 = scalar_lea.hbm %s505_s1, 128 }
   0x6   :  { %p280_p0 = scmp.ne.s32.totalorder %s505_s1, %s279_s24  ;;  %p283_p1 = scmp.lt.u32.totalorder %s279_s24, %s505_s1 }
   0x8   :  { %p285_p2 = pnand %p283_p1, %p280_p0 }
   0xa   :  { %288 = shalt.err (!%p285_p2)
}
   0xb   :  { %s289_s29 = scalar_lea.vmem %s31_s19, 128  ;;  %p294_p4 = scmp.lt.s32.totalorder %s31_s19, %s31_s19 }
   0xc   :  { %p290_p3 = scmp.ne.s32.totalorder %s31_s19, %s289_s29  ;;  %p295_p5 = scmp.lt.s32.totalorder %s289_s29, %s289_s29 }
   0xe   :  { %p296_p6 = por %p295_p5, %p294_p4 }
  0x10   :  { %p297_p7 = pnand %p296_p6, %p290_p3 }
  0x12   :  { %300 = shalt.err (!%p297_p7)
}
  0x13   :  { %33 = dma.hbm_to_vmem [thread:$0]  %s505_s1, 128, %s31_s19, [#allocation6]  }
  0x14   :  { %s301_s9 = scalar_lea.hbm %s504_s0, 128 }
  0x15   :  { %p302_p8 = scmp.ne.s32.totalorder %s504_s0, %s301_s9  ;;  %p305_p9 = scmp.lt.u32.totalorder %s301_s9, %s504_s0 }
  0x17   :  { %p307_p10 = pnand %p305_p9, %p302_p8 }
  0x19   :  { %310 = shalt.err (!%p307_p10)
}
  0x1a   :  { %s311_s14 = scalar_lea.vmem %s21_s21, 128  ;;  %p316_p12 = scmp.lt.s32.totalorder %s21_s21, %s21_s21 }
  0x1b   :  { %p312_p11 = scmp.ne.s32.totalorder %s21_s21, %s311_s14  ;;  %p317_p13 = scmp.lt.s32.totalorder %s311_s14, %s311_s14 }
  0x1d   :  { %p318_p0 = por %p317_p13, %p316_p12 }
  0x1f   :  { %p319_p1 = pnand %p318_p0, %p312_p11 }
  0x21   :  { %322 = shalt.err (!%p319_p1)
}
  0x22   :  { %23 = dma.hbm_to_vmem [thread:$0]  %s504_s0, 128, %s21_s21, [#allocation3]  }
  0x23   :  { %s399_s16 = smov [#allocation7]   ;;  %s400_s18 = smov [#allocation8]  }
  0x24   :  { %s40_s17 = sshll.u32 %s399_s16, 4  ;;  %s49_s19 = sshll.u32 %s400_s18, 4  ;;  %s41_s17 = int_to_ptr.vmem [resolvable:$true] %s40_s17  ;;  %s458_s19 = int_to_ptr.vmem [resolvable:$true] %s49_s19 }
  0x25   :  { %s323_s23 = scalar_lea.hbm %s506_s2, 128 }
  0x26   :  { %p324_p2 = scmp.ne.s32.totalorder %s506_s2, %s323_s23  ;;  %p327_p3 = scmp.lt.u32.totalorder %s323_s23, %s506_s2 }
  0x28   :  { %p329_p4 = pnand %p327_p3, %p324_p2 }
  0x2a   :  { %332 = shalt.err (!%p329_p4)
}
  0x2b   :  { %s333_s0 = scalar_lea.vmem %s41_s17, 128  ;;  %p338_p6 = scmp.lt.s32.totalorder %s41_s17, %s41_s17 }
  0x2c   :  { %p334_p5 = scmp.ne.s32.totalorder %s41_s17, %s333_s0  ;;  %p339_p7 = scmp.lt.s32.totalorder %s333_s0, %s333_s0 }
  0x2e   :  { %p340_p8 = por %p339_p7, %p338_p6 }
  0x30   :  { %p341_p9 = pnand %p340_p8, %p334_p5 }
  0x32   :  { %344 = shalt.err (!%p341_p9)
}
  0x33   :  { %43 = dma.hbm_to_vmem [thread:$0]  %s506_s2, 128, %s41_s17, [#allocation6]  }
  0x34   :  { %s345_s6 = scalar_lea.hbm %s507_s3, 4096 }
  0x35   :  { %p346_p10 = scmp.ne.s32.totalorder %s507_s3, %s345_s6  ;;  %p349_p11 = scmp.lt.u32.totalorder %s345_s6, %s507_s3 }
  0x37   :  { %p351_p12 = pnand %p349_p11, %p346_p10 }
  0x39   :  { %354 = shalt.err (!%p351_p12)
}
  0x3a   :  { %s355_s11 = scalar_lea.vmem %s458_s19, 4096  ;;  %p360_p0 = scmp.lt.s32.totalorder %s458_s19, %s458_s19 }
  0x3b   :  { %p356_p13 = scmp.ne.s32.totalorder %s458_s19, %s355_s11  ;;  %p361_p1 = scmp.lt.s32.totalorder %s355_s11, %s355_s11 }
  0x3d   :  { %p362_p2 = por %p361_p1, %p360_p0 }
  0x3f   :  { %p363_p3 = pnand %p362_p2, %p356_p13 }
  0x41   :  { %366 = shalt.err (!%p363_p3)
}
  0x42   :  { %s401_s2 = smov 128   ;;  %s402_s12 = smov 8  }
  0x43   :  { %55 = dma.hbm_to_vmem [thread:$0]  %s507_s3, 4096, %s458_s19, [#allocation9], %s401_s2, %s401_s2, %s402_s12  }
  0x44   :  { %389 = dma.done.wait [#allocation3], 128  }
  0x45   :  { %390 = vsyncadd [#allocation3], 4294967168 }
  0x46   :  { %391 = dma.done.wait [#allocation6], 256  }
  0x47   :  { %392 = vsyncadd [#allocation6], 4294967040 }
  0x48   :  { %393 = dma.done.wait [#allocation9], 4096  }
  0x49   :  { %394 = vsyncadd [#allocation9], 4294963200  ;;  %v90_v0 = vld [vmem:[#allocation8 + $0x80] sm:$0xff]  ;;  %v91_v1 = vld [vmem:[#allocation8 + $0x88] sm:$0xff]  ;;  %s403_s15 = smov [#allocation10]  }
  0x4a   :  { %v74_v2 = vld [vmem:[#allocation8] sm:$0xff]  ;;  %v238_v3 = vpack.c.bf16 %v91_v1, %v90_v0  ;;  %v75_v4 = vld [vmem:[#allocation8 + $0x8] sm:$0xff]  ;;  %v92_v5 = vld [vmem:[#allocation8 + $0x90] sm:$0xff]  ;;  %s191_s16 = sshll.u32 %s403_s15, 4  ;;  %s192_s16 = int_to_ptr.vmem [resolvable:$true] %s191_s16 }
  0x4b   :  { %v93_v6 = vld [vmem:[#allocation8 + $0x98] sm:$0xff]  ;;  %v240_v7 = vpack.c.bf16 %v75_v4, %v74_v2  ;;  %v76_v9 = vld [vmem:[#allocation8 + $0x10] sm:$0xff]  ;;  %v94_v11 = vld [vmem:[#allocation8 + $0xa0] sm:$0xff]  ;;  %s367_s17 = scalar_lea.vmem %s192_s16, 128  ;;  %p372_p5 = scmp.lt.s32.totalorder %s192_s16, %s192_s16 }
  0x4c   :  { %v242_v8 = vpack.c.bf16 %v93_v6, %v92_v5  ;;  %v77_v10 = vld [vmem:[#allocation8 + $0x18] sm:$0xff]  ;;  %239 = vmatprep.subr.bf16.mxu0 %v238_v3  ;;  %v95_v12 = vld [vmem:[#allocation8 + $0xa8] sm:$0xff]  ;;  %v78_v15 = vld [vmem:[#allocation8 + $0x20] sm:$0xff]  ;;  %p368_p4 = scmp.ne.s32.totalorder %s192_s16, %s367_s17  ;;  %p373_p6 = scmp.lt.s32.totalorder %s367_s17, %s367_s17 }
  0x4d   :  { %241 = vmatpush3.bf16.msra.mxu0 %v240_v7  ;;  %v244_v13 = vpack.c.bf16 %v77_v10, %v76_v9  ;;  %v246_v14 = vpack.c.bf16 %v95_v12, %v94_v11  ;;  %v79_v16 = vld [vmem:[#allocation8 + $0x28] sm:$0xff]  ;;  %v96_v17 = vld [vmem:[#allocation8 + $0xb0] sm:$0xff]  ;;  %v97_v18 = vld [vmem:[#allocation8 + $0xb8] sm:$0xff] }
  0x4e   :  { %243 = vmatprep.subr.bf16.mxu0 %v242_v8  ;;  %v248_v19 = vpack.c.bf16 %v79_v16, %v78_v15  ;;  %v250_v20 = vpack.c.bf16 %v97_v18, %v96_v17  ;;  %v80_v21 = vld [vmem:[#allocation8 + $0x30] sm:$0xff]  ;;  %v81_v22 = vld [vmem:[#allocation8 + $0x38] sm:$0xff]  ;;  %v98_v23 = vld [vmem:[#allocation8 + $0xc0] sm:$0xff]  ;;  %p374_p7 = por %p373_p6, %p372_p5 }
  0x4f   :  { %v99_v24 = vld [vmem:[#allocation8 + $0xc8] sm:$0xff]  ;;  %v73_v25 = vld [vmem:[#allocation7] sm:$0xff]  ;;  %v252_v26 = vpack.c.bf16 %v81_v22, %v80_v21  ;;  %v82_v28 = vld [vmem:[#allocation8 + $0x40] sm:$0xff] }
  0x50   :  { %177 = vmatprep.mubr.f32.mxu0 %v73_v25  ;;  %v254_v27 = vpack.c.bf16 %v99_v24, %v98_v23  ;;  %v83_v29 = vld [vmem:[#allocation8 + $0x48] sm:$0xff]  ;;  %v100_v30 = vld [vmem:[#allocation8 + $0xd0] sm:$0xff]  ;;  %v101_v31 = vld [vmem:[#allocation8 + $0xd8] sm:$0xff]  ;;  %p375_p8 = pnand %p374_p7, %p368_p4 }
  0x51   :  { %245 = vmatpush3.bf16.msra.mxu0 %v244_v13  ;;  %v256_v32 = vpack.c.bf16 %v83_v29, %v82_v28  ;;  %v258_v33 = vpack.c.bf16 %v101_v31, %v100_v30  ;;  %v84_v34 = vld [vmem:[#allocation8 + $0x50] sm:$0xff]  ;;  %v85_v35 = vld [vmem:[#allocation8 + $0x58] sm:$0xff]  ;;  %v102_v36 = vld [vmem:[#allocation8 + $0xe0] sm:$0xff] }
  0x52   :  { %247 = vmatprep.subr.bf16.mxu0 %v246_v14  ;;  %v103_v37 = vld [vmem:[#allocation8 + $0xe8] sm:$0xff]  ;;  %v260_v38 = vpack.c.bf16 %v85_v35, %v84_v34  ;;  %v86_v40 = vld [vmem:[#allocation8 + $0x60] sm:$0xff]  ;;  %v104_v42 = vld [vmem:[#allocation8 + $0xf0] sm:$0xff] }
  0x53   :  { %v262_v39 = vpack.c.bf16 %v103_v37, %v102_v36  ;;  %v87_v41 = vld [vmem:[#allocation8 + $0x68] sm:$0xff]  ;;  %v105_v43 = vld [vmem:[#allocation8 + $0xf8] sm:$0xff]  ;;  %v88_v46 = vld [vmem:[#allocation8 + $0x70] sm:$0xff] }
  0x54   :  { %v264_v44 = vpack.c.bf16 %v87_v41, %v86_v40  ;;  %v266_v45 = vpack.c.bf16 %v105_v43, %v104_v42  ;;  %v89_v47 = vld [vmem:[#allocation8 + $0x78] sm:$0xff]  ;;  %v70_v49 = vld [vmem:[#allocation2] sm:$0xff]  ;;  %v71_v50 = vld [vmem:[#allocation5] sm:$0xff] }
  0x55   :  { %249 = vmatpush3.bf16.msra.mxu0 %v248_v19  ;;  %v268_v48 = vpack.c.bf16 %v89_v47, %v88_v46  ;;  %v72_v51 = vmul.f32 %v71_v50, %v70_v49  ;;  %v202_v53 = vld [vmem:[%s508_s4] ss:$0 sm:$0xff] }
  0x56   :  { %251 = vmatprep.subr.bf16.mxu0 %v250_v20 }
  0x59   :  { %253 = vmatpush3.bf16.msra.mxu0 %v252_v26 }
  0x5a   :  { %255 = vmatprep.subr.bf16.mxu0 %v254_v27 }
  0x5d   :  { %257 = vmatpush3.bf16.msra.mxu0 %v256_v32 }
  0x5e   :  { %259 = vmatprep.subr.bf16.mxu0 %v258_v33 }
  0x61   :  { %261 = vmatpush3.bf16.msra.mxu0 %v260_v38 }
  0x62   :  { %263 = vmatprep.subr.bf16.mxu0 %v262_v39 }
  0x65   :  { %265 = vmatpush3.bf16.msra.mxu0 %v264_v44 }
  0x66   :  { %267 = vmatprep.subr.bf16.mxu0 %v266_v45 }
  0x69   :  { %269 = vmatpush3.bf16.msra.mxu0 %v268_v48 }
  0x6c   :  { %178 = vmatmul.mubr.f32.vlgmr.msra.gmra.mrb[0].mxu0 %v72_v51 }
 0x13f   :  { %v235_v52 = vpop.f32.mrb[0].mxu0 }
 0x140   :  { %v236_v54 = vpop.f32.mrb[1].mxu0 }
 0x141   :  { %v237_v55 = vadd.f32 %v236_v54, %v235_v52 }
 0x143   :  { %v180_v56 = vadd.f32 %v237_v55, %v202_v53 }
 0x145   :  { %277 = vtanh.f32 %v180_v56 }
 0x14f   :  { %v278_v57 = vpop.eup %277 }
 0x150   :  { %184 = vst [vmem:[#allocation10] sm:$0xff] %v278_v57 }
 0x151   :  { %378 = shalt.err (!%p375_p8)
}
 0x152   :  { %s379_s4 = scalar_lea.hbm %s509_s5, 128 }
 0x153   :  { %p380_p9 = scmp.ne.s32.totalorder %s509_s5, %s379_s4  ;;  %p383_p10 = scmp.lt.u32.totalorder %s379_s4, %s509_s5 }
 0x155   :  { %p385_p11 = pnand %p383_p10, %p380_p9 }
 0x157   :  { %388 = shalt.err (!%p385_p11)
}
 0x158   :  { %194 = dma.vmem_to_hbm [thread:$0]  %s192_s16, 128, %s509_s5, [#allocation4]  }
 0x159   :  { %395 = dma.done.wait [#allocation4], 128  }
 0x15a   :  { %396 = vsyncadd [#allocation4], 4294967168 }
 0x15b   :  { %198 = vsyncpa [#allocation3], 1 }
 0x15c   :  { %199 = vsyncpa [#allocation6], 1 }
 0x15d   :  { %200 = vsyncpa [#allocation9], 1 }
 0x15e   :  { %201 = vsyncpa [#allocation4], 1 }

</bundles_post_ra>
